<compile_context>
chip_gen: v6e
topology: v6e:2x2x1
jax: 0.10.0
libtpu: 0.0.40
codegen_flags: <defaults>
</compile_context>

<pallas_src>
import jax
import jax.numpy as jnp
from jax.experimental import pallas as pl
from jax.experimental.pallas import tpu as pltpu


def _round_up(v, m):
    return (v + m - 1) // m * m


def _pick_tk(K, cap=2048):
    """Full K if it fits; otherwise the largest 128-multiple divisor of K so
    no padding/garbage ever enters the contraction."""
    if K <= cap:
        return K
    best = None
    t = 128
    while t <= cap:
        if K % t == 0:
            best = t
        t += 128
    if best is None:
        # TODO(synk): huge K with no 128-multiple divisor -> single full-K block
        # (fine on v5e/v6e 128 MiB VMEM, may be tight on v7x).
        return K
    return best


def _epilogue(z, out_dtype):
    j1 = jnp.clip(z, 0.0, 6.0)                  # ReLU6
    q1 = j1 * jnp.minimum(j1 + 3.0, 6.0)        # j1 >= 0 -> lower clamp is free
    return (q1 * (1.0 / 6.0)).astype(out_dtype)  # multiply, not divide


def _kernel_vpu_small(x_ref, w_ref, b_ref, o_ref):
    # Tiny contraction dim: unrolled broadcasted FMAs on the VPU, no MXU.
    x = x_ref[...]                               # (TM, IN)
    w = w_ref[...]                               # (IN, TN)
    tm = x.shape[0]
    tn = w.shape[1]
    z = jnp.broadcast_to(b_ref[...], (tm, tn)).astype(jnp.float32)
    for k in range(x.shape[1]):                  # static, fully unrolled
        z = z + x[:, k:k + 1].astype(jnp.float32) * w[k:k + 1, :].astype(jnp.float32)
    o_ref[...] = _epilogue(z, o_ref.dtype)


def _kernel_mxu(x_ref, w_ref, b_ref, o_ref):
    z = jnp.dot(x_ref[...], w_ref[...], preferred_element_type=jnp.float32)
    o_ref[...] = _epilogue(z + b_ref[...], o_ref.dtype)


def _kernel_mxu_splitk(x_ref, w_ref, b_ref, o_ref, acc_ref):
    k = pl.program_id(2)

    @pl.when(k == 0)
    def _():
        acc_ref[...] = jnp.zeros_like(acc_ref)

    acc_ref[...] += jnp.dot(x_ref[...], w_ref[...],
                            preferred_element_type=jnp.float32)

    @pl.when(k == pl.num_programs(2) - 1)
    def _():
        o_ref[...] = _epilogue(acc_ref[...] + b_ref[...], o_ref.dtype)


def model_forward(x, w, b):
    """x: (B, S, IN) f32; w: (OUT, IN) PyTorch layout; b: (OUT,) -> (B, S, OUT)."""
    B, S, IN = x.shape
    OUT = w.shape[0]
    M = B * S

    # No padding of activation/output: reshape is free, IN stays a full block dim.
    x2d = x.reshape(M, IN)
    wt = jnp.transpose(w)          # (IN, OUT): one-time, tiny, wrapper-side
    b2d = b.reshape(1, OUT)

    # ---- tile selection ----------------------------------------------------
    # M tile: multiple of 8, capped at 512; if one tile would cover all of M,
    # split it so v7x megacore has >= 2 M-tiles to shard.
    M8 = _round_up(M, 8)
    TM = min(512, M8)
    if TM == M8 and M8 >= 16:
        TM = _round_up(-(-M8 // 2), 8)
    grid_m = pl.cdiv(M, TM)

    # N tile: cover OUT with one lane-dense tile when possible (x then streams
    # exactly once); otherwise 512-wide tiles with a masked boundary tile.
    TN = OUT if OUT <= 512 else 512
    grid_n = pl.cdiv(OUT, TN)

    # K block: full IN unless large, then an exact 128-multiple divisor.
    TK = _pick_tk(IN, cap=2048)
    grid_k = pl.cdiv(IN, TK)

    # ---- grid ordering: stream the larger operand once ---------------------
    x_major = (M * IN) >= (IN * OUT)
    use_vpu = (IN <= 16) and (grid_k == 1)

    if grid_k == 1:
        kernel = _kernel_vpu_small if use_vpu else _kernel_mxu
        scratch = []
        dims = ("parallel", "parallel")
        if x_major:
            grid = (grid_m, grid_n)
            xmap = lambda i, j: (i, 0)
            wmap = lambda i, j: (0, j)
            bmap = lambda i, j: (0, j)
            omap = lambda i, j: (i, j)
        else:
            grid = (grid_n, grid_m)
            xmap = lambda j, i: (i, 0)
            wmap = lambda j, i: (0, j)
            bmap = lambda j, i: (0, j)
            omap = lambda j, i: (i, j)
    else:
        kernel = _kernel_mxu_splitk
        scratch = [pltpu.VMEM((TM, TN), jnp.float32)]
        dims = ("parallel", "parallel", "arbitrary")
        if x_major:
            grid = (grid_m, grid_n, grid_k)
            xmap = lambda i, j, k: (i, k)
            wmap = lambda i, j, k: (k, j)
            bmap = lambda i, j, k: (0, j)
            omap = lambda i, j, k: (i, j)
        else:
            grid = (grid_n, grid_m, grid_k)
            xmap = lambda j, i, k: (i, k)
            wmap = lambda j, i, k: (k, j)
            bmap = lambda j, i, k: (0, j)
            omap = lambda j, i, k: (i, j)

    # Advisory cost with actual (unpadded) DMA traffic, incl. re-streams.
    if x_major:
        re_x = 1 if grid_k == 1 else grid_n
        re_w = grid_m
    else:
        re_x = grid_n
        re_w = 1 if grid_k == 1 else grid_m
    cost = pl.CostEstimate(
        flops=2 * M * IN * OUT,
        transcendentals=0,
        bytes_accessed=4 * (re_x * M * IN + re_w * IN * OUT + M * OUT + OUT),
    )

    out2d = pl.pallas_call(
        kernel,
        out_shape=jax.ShapeDtypeStruct((M, OUT), x.dtype),
        grid_spec=pltpu.PrefetchScalarGridSpec(
            num_scalar_prefetch=0,
            grid=grid,
            in_specs=[
                pl.BlockSpec((TM, TK), xmap),   # activation tile
                pl.BlockSpec((TK, TN), wmap),   # weight block (IN, OUT layout)
                pl.BlockSpec((1, TN), bmap),    # bias block
            ],
            out_specs=pl.BlockSpec((TM, TN), omap),
            scratch_shapes=scratch,
        ),
        compiler_params=pltpu.CompilerParams(
            dimension_semantics=dims,
            # Tiles are capped (<~20 MiB live incl. double buffers); 48 MiB is
            # above v5e/v6e scoped defaults and under v7x physical VMEM.
            vmem_limit_bytes=48 * 1024 * 1024,
        ),
        cost_estimate=cost,
    )(x2d, wt, b2d)

    return out2d.reshape(B, S, OUT)


if __name__ == "__main__":
    key = jax.random.PRNGKey(0)
    kx, kw, kb = jax.random.split(key, 3)

    # PyTorch module: Linear(3, 4) acting on the last dim of the input.
    B, S, IN, OUT = 2, 8, 3, 4
    x = jax.random.normal(kx, (B, S, IN), dtype=jnp.float32)
    bound = float(IN) ** -0.5
    w = jax.random.uniform(kw, (OUT, IN), dtype=jnp.float32,
                           minval=-bound, maxval=bound)
    b = jax.random.uniform(kb, (OUT,), dtype=jnp.float32,
                           minval=-bound, maxval=bound)

    y = model_forward(x, w, b)
    jax.block_until_ready(y)

    # Pure-JAX reference
    z = x @ w.T + b
    j1 = jnp.clip(z, 0.0, 6.0)
    ref = j1 * jnp.clip(j1 + 3.0, 0.0, 6.0) / 6.0
    assert y.shape == (B, S, OUT)
    assert jnp.allclose(y, ref, atol=1e-5, rtol=1e-5)

    print("KERNEL_OK")
</pallas_src>

<mosaic_0001>
module attributes {stable_mosaic.version = 11 : i64} {
  func.func @_kernel_vpu_small(%arg0: i32, %arg1: i32, %arg2: memref<8x3xf32, #tpu.memory_space<vmem>>, %arg3: memref<3x4xf32, #tpu.memory_space<vmem>>, %arg4: memref<1x4xf32, #tpu.memory_space<vmem>>, %arg5: memref<8x4xf32, #tpu.memory_space<vmem>>) attributes {dimension_semantics = [#tpu.dimension_semantics<parallel>, #tpu.dimension_semantics<parallel>], iteration_bounds = array<i64: 2, 1>, scalar_prefetch = 0 : i64, scratch_operands = 0 : i64, tpu.core_type = #tpu.core_type<tc>, window_params = [{transform_indices = @transform_0, window_bounds = array<i64: 8, 3>}, {transform_indices = @transform_1, window_bounds = array<i64: 3, 4>}, {transform_indices = @transform_2, window_bounds = array<i64: 1, 4>}, {transform_indices = @transform_3, window_bounds = array<i64: 8, 4>}]} {
    %c0 = arith.constant 0 : index
    %c0_0 = arith.constant 0 : index
    %0 = vector.load %arg2[%c0, %c0_0] : memref<8x3xf32, #tpu.memory_space<vmem>>, vector<8x3xf32>
    %c0_1 = arith.constant 0 : index
    %c0_2 = arith.constant 0 : index
    %1 = vector.load %arg3[%c0_1, %c0_2] : memref<3x4xf32, #tpu.memory_space<vmem>>, vector<3x4xf32>
    %c0_3 = arith.constant 0 : index
    %c0_4 = arith.constant 0 : index
    %2 = vector.load %arg4[%c0_3, %c0_4] : memref<1x4xf32, #tpu.memory_space<vmem>>, vector<1x4xf32>
    %3 = vector.shape_cast %2 : vector<1x4xf32> to vector<1x4xf32>
    %4 = vector.broadcast %3 : vector<1x4xf32> to vector<8x4xf32>
    %5 = vector.extract_strided_slice %0 {offsets = [0, 0], sizes = [8, 1], strides = [1, 1]} : vector<8x3xf32> to vector<8x1xf32>
    %6 = vector.extract_strided_slice %1 {offsets = [0, 0], sizes = [1, 4], strides = [1, 1]} : vector<3x4xf32> to vector<1x4xf32>
    %7 = vector.broadcast %5 : vector<8x1xf32> to vector<8x4xf32>
    %8 = vector.broadcast %6 : vector<1x4xf32> to vector<8x4xf32>
    %9 = arith.mulf %7, %8 : vector<8x4xf32>
    %10 = arith.addf %4, %9 : vector<8x4xf32>
    %11 = vector.extract_strided_slice %0 {offsets = [0, 1], sizes = [8, 1], strides = [1, 1]} : vector<8x3xf32> to vector<8x1xf32>
    %12 = vector.extract_strided_slice %1 {offsets = [1, 0], sizes = [1, 4], strides = [1, 1]} : vector<3x4xf32> to vector<1x4xf32>
    %13 = vector.broadcast %11 : vector<8x1xf32> to vector<8x4xf32>
    %14 = vector.broadcast %12 : vector<1x4xf32> to vector<8x4xf32>
    %15 = arith.mulf %13, %14 : vector<8x4xf32>
    %16 = arith.addf %10, %15 : vector<8x4xf32>
    %17 = vector.extract_strided_slice %0 {offsets = [0, 2], sizes = [8, 1], strides = [1, 1]} : vector<8x3xf32> to vector<8x1xf32>
    %18 = vector.extract_strided_slice %1 {offsets = [2, 0], sizes = [1, 4], strides = [1, 1]} : vector<3x4xf32> to vector<1x4xf32>
    %19 = vector.broadcast %17 : vector<8x1xf32> to vector<8x4xf32>
    %20 = vector.broadcast %18 : vector<1x4xf32> to vector<8x4xf32>
    %21 = arith.mulf %19, %20 : vector<8x4xf32>
    %22 = arith.addf %16, %21 : vector<8x4xf32>
    %cst = arith.constant 0.000000e+00 : f32
    %cst_5 = arith.constant 6.000000e+00 : f32
    %23 = vector.broadcast %cst : f32 to vector<8x4xf32>
    %24 = arith.maximumf %23, %22 : vector<8x4xf32>
    %25 = vector.broadcast %cst_5 : f32 to vector<8x4xf32>
    %26 = arith.minimumf %25, %24 : vector<8x4xf32>
    %cst_6 = arith.constant 3.000000e+00 : f32
    %27 = vector.broadcast %cst_6 : f32 to vector<8x4xf32>
    %28 = arith.addf %26, %27 : vector<8x4xf32>
    %cst_7 = arith.constant 6.000000e+00 : f32
    %29 = vector.broadcast %cst_7 : f32 to vector<8x4xf32>
    %30 = arith.minimumf %28, %29 : vector<8x4xf32>
    %31 = arith.mulf %26, %30 : vector<8x4xf32>
    %cst_8 = arith.constant 0.166666672 : f32
    %32 = vector.broadcast %cst_8 : f32 to vector<8x4xf32>
    %33 = arith.mulf %31, %32 : vector<8x4xf32>
    %c0_9 = arith.constant 0 : index
    %c0_10 = arith.constant 0 : index
    %34 = vector.load %arg5[%c0_9, %c0_10] : memref<8x4xf32, #tpu.memory_space<vmem>>, vector<8x4xf32>
    tpu.vector_store %arg5[%c0_9, %c0_10], %33 {strides = array<i32>} : memref<8x4xf32, #tpu.memory_space<vmem>>, vector<8x4xf32>,
    return
  }
  func.func @transform_0(%arg0: i32, %arg1: i32) -> (i32, i32) {
    %c0_i32 = arith.constant 0 : i32
    %c0_i32_0 = arith.constant 0 : i32
    return %arg0, %c0_i32 : i32, i32
  }
  func.func @transform_1(%arg0: i32, %arg1: i32) -> (i32, i32) {
    %c0_i32 = arith.constant 0 : i32
    %c0_i32_0 = arith.constant 0 : i32
    return %c0_i32, %arg1 : i32, i32
  }
  func.func @transform_2(%arg0: i32, %arg1: i32) -> (i32, i32) {
    %c0_i32 = arith.constant 0 : i32
    %c0_i32_0 = arith.constant 0 : i32
    return %c0_i32, %arg1 : i32, i32
  }
  func.func @transform_3(%arg0: i32, %arg1: i32) -> (i32, i32) {
    %c0_i32 = arith.constant 0 : i32
    return %arg0, %arg1 : i32, i32
  }
}

</mosaic_0001>

<bundles_post_ra>
// kernel: tpu_custom_call.1
= control target key start
LH: loop header
LB: loop body
LE: loop exit
PB: predicated region body
PF: predicated region fallthrough
CT: control target
= control target key end

     0   :  { %s454_s12 = smov 0   ;;  %s456_s13 = smov 0   ;;  %s500_s0 = inlined_call_operand.vmem [shape: f32[16,3], index: 0, kind: input, shape index: {}]   ;;  %s501_s1 = inlined_call_operand.vmem [shape: f32[3,4], index: 1, kind: input, shape index: {}]   ;;  %s502_s2 = inlined_call_operand.vmem [shape: f32[1,4], index: 2, kind: input, shape index: {}]   ;;  %s503_s3 = inlined_call_operand.vmem [shape: f32[16,4], index: 3, kind: output, shape index: {}]  }
   0x1   :  { %s458_s14 = smov 0  }
   0x2 LB: > { %s25_s15 = sadd.s32 1, %s425_s13  ;;  %p370_p0 = scmp.ge.s32.totalorder %s429_s14, 1  ;;  %s429_s14 = sphi %s458_s14, %s13_s14   ;;  %s425_s13 = sphi %s456_s13, %s505_s13   ;;  %s421_s12 = sphi %s454_s12, %s504_s12  }
   0x3   : > { %p27_p1 = scmp.ge.s32.totalorder %s25_s15, 2  ;;  %p167_p2 = scmp.lt.s32.totalorder %s429_s14, 3 }
   0x5   : > { %s507_s15 = smov (%p27_p1, %s25_s15), 0  ;;  %p168_p3 = pnand %p370_p0, %p167_p2 }
   0x6   : > { %p199_p4 = scmp.lt.s32.totalorder (!%p168_p3), %s421_s12, 1 }
   0x7   : > { %171 = sbr.rel (%p168_p3) target bundleno = 164 (0xa4), region = 32 }
   0xc   : > { %v431_v0 = vmov 0   ;;  %v432_v1 = vmov 2   ;;  %s509_s12 = smov (!%p199_p4, %s421_s12), 1  ;;  %v433_v3 = vmov 1   ;;  %v231_v4 = vlaneseq  ;;  %v218_v7 = vld [vmem:[%s501_s1] sm:$0x7] }
   0xd   : > { %403 = vset.pattern.permute.xlu0 %v431_v0  ;;  %405 = vset.pattern.permute.xlu1 %v432_v1  ;;  %s371_s16 = sshll.u32 %s509_s12, 3  ;;  %v373_v15 = vld [vmem:[%s502_s2] ss:$0 sm:$0xff]  ;;  %vm263_vm0 = vcmask 31744  }
   0xe   : > { %s202_s19 = scalar_lea.vmem %s500_s0, %s371_s16  ;;  %v232_v5 = vshrl.u32 %v231_v4, 7  ;;  %s216_s26 = scalar_lea.vmem %s503_s3, %s371_s16 }
   0xf   : > { %v217_v2 = vld [vmem:[%s202_s19] sm:$0xff] }
  0x10   : > { %228 = vperm.xlu0 %403, %v217_v2   ;;  %248 = vperm.xlu1 %405, %v217_v2   ;;  %v233_v6 = vsub.s32 0, %v232_v5  ;;  %v243_v9 = vsub.s32 1, %v232_v5  ;;  %v253_v10 = vsub.s32 2, %v232_v5 }
  0x12   : > { %v234_v8 = vrot.slane %v218_v7, %v233_v6  ;;  %v244_v13 = vrot.slane %v218_v7, %v243_v9  ;;  %v254_v14 = vrot.slane %v218_v7, %v253_v10 }
  0x14   : > { %404 = vset.pattern.permute.xlu0 %v433_v3 }
  0x15   : > { %238 = vperm.xlu0 %404, %v217_v2  }
  0x19   : > { %406 = vset.pattern.permute.xlu0 %v432_v1 }
  0x8b   : > { %v229_v11 = vpop.permute.xlu0 %228  ;;  %v249_v16 = vpop.permute.xlu1 %248 }
  0x8c   : > { %v235_v12 = vmul.f32 %v234_v8, %v229_v11  ;;  %v255_v20 = vmul.f32 %v254_v14, %v249_v16 }
  0x8e   : > { %v236_v18 = vadd.f32 %v373_v15, %v235_v12 }
  0x90   : > { %v239_v17 = vpop.permute.xlu0 %238 }
  0x91   : > { %v245_v19 = vmul.f32 %v244_v13, %v239_v17 }
  0x93   : > { %v246_v21 = vadd.f32 %v245_v19, %v236_v18 }
  0x95   : > { %v256_v22 = vadd.f32 %v255_v20, %v246_v21 }
  0x97   : > { %v257_v23 = vmax.f32 %v256_v22, 0.0 }
  0x99   : > { %v258_v24 = vmin.f32 %v257_v23, 6.0 }
  0x9b   : > { %v259_v25 = vadd.f32 3.0, %v258_v24 }
  0x9d   : > { %v260_v26 = vmin.f32 %v259_v25, 6.0 }
  0x9f   : > { %v261_v27 = vmul.f32 %v260_v26, %v258_v24 }
  0xa1   : > { %v262_v28 = vmul.f32 0.16666667, %v261_v27 }
  0xa3   : > { %264 = vst.msk [vmem:[%s216_s26] sm:$0xff] %vm263_vm0, %v262_v28 }
  0xa4 PF: > { %s13_s14 = sadd.s32 1, %s429_s14   ;;  %s504_s12 = smov %s425_s13 }
  0xa5   : > { %p10_p5 = scmp.ge.s32.totalorder %s13_s14, 4   ;;  %s505_s13 = smov %s507_s15 }
  0xa7   :  { %12 = sbr.rel (!%p10_p5) target bundleno = 2 (0x2), region = 68 }

</bundles_post_ra>
